<compile_context>
chip_gen: v7x
topology: tpu7x:2x2x1
jax: 0.10.0
libtpu: 0.0.40
codegen_flags: <defaults>
</compile_context>

<pallas_src>
import functools

import jax
import jax.numpy as jnp
from jax.experimental import pallas as pl
from jax.experimental.pallas import tpu as pltpu

_LN2 = 0.6931471805599453


def _round_up(x: int, n: int) -> int:
    return ((x + n - 1) // n) * n


def _nll_tile(pred_tile, target_tile, *, eps, d):
    """Elementwise Laplace NLL on one (tm, D) tile, computed in f32."""
    p = pred_tile.astype(jnp.float32)
    t = target_tile.astype(jnp.float32)
    loc = p[:, :d]
    scale = jnp.maximum(p[:, d:], jnp.float32(eps))          # scale.clamp_(min=eps)
    # log(2*scale) == log(scale) + ln(2); divide via EUP reciprocal.
    return (jnp.log(scale) + jnp.float32(_LN2)) + jnp.abs(t - loc) * pl.reciprocal(
        scale, approx=False
    )


def _laplace_nll_partial_sum_kernel(
    pred_ref, target_ref, out_ref, *, eps, d, tm, m_valid, mask_rows
):
    """Per-tile partial sum: each grid step writes its own (8,128) output block."""
    nll = _nll_tile(pred_ref[...], target_ref[...], eps=eps, d=d)
    if mask_rows:  # static: only emitted when M % tm != 0 (last tile is partial)
        row = pl.program_id(0) * tm + jax.lax.broadcasted_iota(jnp.int32, nll.shape, 0)
        nll = jnp.where(row < m_valid, nll, 0.0)
    partial = jnp.sum(nll)
    out_ref[...] = jnp.full((8, 128), partial, dtype=jnp.float32)


def _laplace_nll_none_kernel(pred_ref, target_ref, out_ref, *, eps, d):
    """Elementwise nll (reduction='none'); OOB rows of the last tile are dropped."""
    nll = _nll_tile(pred_ref[...], target_ref[...], eps=eps, d=d)
    out_ref[...] = nll.astype(out_ref.dtype)


def _pick_tile_rows(m, d, pred_itemsize, tgt_itemsize, out_itemsize,
                    *, max_rows=4096, block_budget_bytes=12 * 1024 * 1024):
    """Largest multiple-of-16 row tile whose double-buffered blocks fit the budget."""
    # Double-buffered pipeline: 2 live copies of every streamed block.
    per_row_bytes = 2 * d * (2 * pred_itemsize + tgt_itemsize + out_itemsize)
    tm = block_budget_bytes // max(per_row_bytes, 1)
    cap = max(16, (m // 16) * 16)            # don't make tiles (much) bigger than M
    tm = min(tm, max_rows, cap)
    tm = max(16, (tm // 16) * 16)            # multiple of 16 (f32 & bf16 sublane tiling)
    return tm


def laplace_nll_loss(pred, target, *, eps=1e-6, reduction="mean"):
    """Pallas TPU implementation of LaplaceNLLLoss.forward."""
    if pred.shape[:-1] != target.shape[:-1] or pred.shape[-1] != 2 * target.shape[-1]:
        raise ValueError("pred must be target-shaped with last dim 2*D")
    if reduction not in ("mean", "sum", "none"):
        raise ValueError(f"{reduction} is not a valid value for reduction")

    d = target.shape[-1]
    lead_shape = target.shape[:-1]
    m = 1
    for s in lead_shape:
        m *= s

    pred2 = pred.reshape(m, 2 * d)
    target2 = target.reshape(m, d)
    out_dtype = jnp.promote_types(pred.dtype, target.dtype)

    pred_isz = jnp.dtype(pred.dtype).itemsize
    tgt_isz = jnp.dtype(target.dtype).itemsize
    out_isz = jnp.dtype(out_dtype).itemsize if reduction == "none" else 0

    tm = _pick_tile_rows(m, d, pred_isz, tgt_isz, out_isz)
    num_tiles = -(-m // tm)                     # cdiv
    mask_rows = (m % tm) != 0

    in_specs = [
        pl.BlockSpec((tm, 2 * d), lambda i: (i, 0)),
        pl.BlockSpec((tm, d), lambda i: (i, 0)),
    ]
    cparams = pltpu.CompilerParams(
        dimension_semantics=("parallel",),      # independent tiles; v7x can use both TCs
        vmem_limit_bytes=32 * 1024 * 1024,      # explicit budget, safe on v5e/v6e/v7x
    )

    if reduction in ("mean", "sum"):
        partial_blocks = pl.pallas_call(
            functools.partial(
                _laplace_nll_partial_sum_kernel,
                eps=float(eps), d=d, tm=tm, m_valid=m, mask_rows=mask_rows,
            ),
            out_shape=jax.ShapeDtypeStruct((num_tiles * 8, 128), jnp.float32),
            grid_spec=pltpu.PrefetchScalarGridSpec(
                num_scalar_prefetch=0,
                grid=(num_tiles,),
                in_specs=in_specs,
                out_specs=pl.BlockSpec((8, 128), lambda i: (i, 0)),
            ),
            compiler_params=cparams,
        )(pred2, target2)
        # Each tile broadcast its partial sum over its (8,128) block; take one lane.
        partials = partial_blocks.reshape(num_tiles, 8, 128)[:, 0, 0]
        total = jnp.sum(partials)
        if reduction == "mean":
            total = total / jnp.float32(m * d)
        return total.astype(out_dtype)

    # reduction == "none"
    nll = pl.pallas_call(
        functools.partial(_laplace_nll_none_kernel, eps=float(eps), d=d),
        out_shape=jax.ShapeDtypeStruct((m, d), out_dtype),
        grid_spec=pltpu.PrefetchScalarGridSpec(
            num_scalar_prefetch=0,
            grid=(num_tiles,),
            in_specs=in_specs,
            out_specs=pl.BlockSpec((tm, d), lambda i: (i, 0)),
        ),
        compiler_params=cparams,
    )(pred2, target2)
    return nll.reshape(*lead_shape, d)


if __name__ == "__main__":
    key = jax.random.PRNGKey(0)
    k1, k2, k3, k4 = jax.random.split(key, 4)

    def ref_nll(p, t, eps=1e-6):
        loc, scale = jnp.split(p, 2, axis=-1)
        scale = jnp.maximum(scale, eps)
        return jnp.log(2.0 * scale) + jnp.abs(t - loc) / scale

    # Case 1: pred [B, N, 2*D], target [B, N, D]; row count divisible by the tile.
    B, N, D = 2, 8, 16
    pred = jax.random.normal(k1, (B, N, 2 * D), dtype=jnp.float32)
    target = jax.random.normal(k2, (B, N, D), dtype=jnp.float32)

    out_mean = jax.block_until_ready(laplace_nll_loss(pred, target, reduction="mean"))
    assert jnp.allclose(out_mean, ref_nll(pred, target).mean(), rtol=1e-5, atol=1e-5)

    out_none = jax.block_until_ready(laplace_nll_loss(pred, target, reduction="none"))
    assert out_none.shape == (B, N, D)
    assert jnp.allclose(out_none, ref_nll(pred, target), rtol=1e-5, atol=1e-5)

    # Case 2: leading size (25 rows) not divisible by the row tile -> exercises the
    # partial last tile (masked in the sum path, dropped writes in the none path).
    B2, N2, D2 = 5, 5, 8
    pred_b = jax.random.normal(k3, (B2, N2, 2 * D2), dtype=jnp.float32)
    target_b = jax.random.normal(k4, (B2, N2, D2), dtype=jnp.float32)

    out_sum = jax.block_until_ready(laplace_nll_loss(pred_b, target_b, reduction="sum"))
    assert jnp.allclose(out_sum, ref_nll(pred_b, target_b).sum(), rtol=1e-5, atol=1e-5)

    out_none2 = jax.block_until_ready(laplace_nll_loss(pred_b, target_b, reduction="none"))
    assert jnp.allclose(out_none2, ref_nll(pred_b, target_b), rtol=1e-5, atol=1e-5)

    print("KERNEL_OK")
</pallas_src>

<mosaic_0001>
module attributes {stable_mosaic.version = 11 : i64} {
  func.func @_laplace_nll_partial_sum_kernel(%arg0: i32, %arg1: memref<16x32xf32, #tpu.memory_space<vmem>>, %arg2: memref<16x16xf32, #tpu.memory_space<vmem>>, %arg3: memref<8x128xf32, #tpu.memory_space<vmem>>) attributes {dimension_semantics = [#tpu.dimension_semantics<parallel>], iteration_bounds = array<i64: 1>, scalar_prefetch = 0 : i64, scratch_operands = 0 : i64, tpu.core_type = #tpu.core_type<tc>, window_params = [{transform_indices = @transform_0, window_bounds = array<i64: 16, 32>}, {transform_indices = @transform_1, window_bounds = array<i64: 16, 16>}, {transform_indices = @transform_2, window_bounds = array<i64: 8, 128>}]} {
    %c0 = arith.constant 0 : index
    %c0_0 = arith.constant 0 : index
    %0 = vector.load %arg1[%c0, %c0_0] : memref<16x32xf32, #tpu.memory_space<vmem>>, vector<16x32xf32>
    %c0_1 = arith.constant 0 : index
    %c0_2 = arith.constant 0 : index
    %1 = vector.load %arg2[%c0_1, %c0_2] : memref<16x16xf32, #tpu.memory_space<vmem>>, vector<16x16xf32>
    %2 = vector.extract_strided_slice %0 {offsets = [0, 0], sizes = [16, 16], strides = [1, 1]} : vector<16x32xf32> to vector<16x16xf32>
    %3 = vector.extract_strided_slice %0 {offsets = [0, 16], sizes = [16, 16], strides = [1, 1]} : vector<16x32xf32> to vector<16x16xf32>
    %cst = arith.constant 9.99999997E-7 : f32
    %4 = vector.broadcast %cst : f32 to vector<16x16xf32>
    %5 = arith.maximumf %3, %4 : vector<16x16xf32>
    %6 = math.log %5 : vector<16x16xf32>
    %cst_3 = arith.constant 0.693147182 : f32
    %7 = vector.broadcast %cst_3 : f32 to vector<16x16xf32>
    %8 = arith.addf %6, %7 : vector<16x16xf32>
    %9 = arith.subf %1, %2 : vector<16x16xf32>
    %10 = math.absf %9 : vector<16x16xf32>
    %11 = tpu.reciprocal %5 : vector<16x16xf32> -> vector<16x16xf32>
    %12 = arith.mulf %10, %11 : vector<16x16xf32>
    %13 = arith.addf %8, %12 : vector<16x16xf32>
    %14 = vector.shape_cast %13 : vector<16x16xf32> to vector<1x16x16xf32>
    %cst_4 = arith.constant dense<0.000000e+00> : vector<1xf32>
    %15 = vector.multi_reduction <add>, %14, %cst_4 [1, 2] : vector<1x16x16xf32> to vector<1xf32>
    %16 = vector.shape_cast %15 : vector<1xf32> to vector<1x1x1xf32>
    %17 = vector.extract %16[0, 0, 0] : f32 from vector<1x1x1xf32>
    %18 = vector.broadcast %17 : f32 to vector<8x128xf32>
    %c0_5 = arith.constant 0 : index
    %c0_6 = arith.constant 0 : index
    %19 = vector.load %arg3[%c0_5, %c0_6] : memref<8x128xf32, #tpu.memory_space<vmem>>, vector<8x128xf32>
    tpu.vector_store %arg3[%c0_5, %c0_6], %18 {strides = array<i32>} : memref<8x128xf32, #tpu.memory_space<vmem>>, vector<8x128xf32>,
    return
  }
  func.func @transform_0(%arg0: i32) -> (i32, i32) {
    %c0_i32 = arith.constant 0 : i32
    %c0_i32_0 = arith.constant 0 : i32
    return %arg0, %c0_i32 : i32, i32
  }
  func.func @transform_1(%arg0: i32) -> (i32, i32) {
    %c0_i32 = arith.constant 0 : i32
    %c0_i32_0 = arith.constant 0 : i32
    return %arg0, %c0_i32 : i32, i32
  }
  func.func @transform_2(%arg0: i32) -> (i32, i32) {
    %c0_i32 = arith.constant 0 : i32
    %c0_i32_0 = arith.constant 0 : i32
    return %arg0, %c0_i32 : i32, i32
  }
}

</mosaic_0001>

<bundles_post_ra>
// kernel: tpu_custom_call.1
= control target key start
LH: loop header
LB: loop body
LE: loop exit
PB: predicated region body
PF: predicated region fallthrough
CT: control target
= control target key end

     0   :  { %7 = vsyncpa [#allocation3], 0  ;;  %s264_s0 = inlined_call_operand.hbm [shape: f32[16,32], index: 0, kind: input, shape index: {}]   ;;  %s265_s1 = inlined_call_operand.hbm [shape: f32[16,16], index: 1, kind: input, shape index: {}]   ;;  %s266_s2 = inlined_call_operand.hbm [shape: f32[8,128], index: 2, kind: output, shape index: {}]  }
   0x1   :  { %8 = vsyncpa [#allocation6], 0 }
   0x2   :  { %9 = vsyncpa [#allocation4], 0  ;;  %s206_s9 = smov [#allocation2]   ;;  %s134_s13 = scalar_lea.hbm %s264_s0, 256 }
   0x3   :  { %s15_s10 = sshll.u32 %s206_s9, 4  ;;  %p135_p0 = scmp.ne.s32.totalorder %s264_s0, %s134_s13  ;;  %s16_s10 = int_to_ptr.vmem [resolvable:$true] %s15_s10 }
   0x4   :  { %p138_p1 = scmp.lt.u32.totalorder %s134_s13, %s264_s0 }
   0x6   :  { %p140_p2 = pnand %p138_p1, %p135_p0 }
   0x8   :  { %143 = shalt.err (!%p140_p2)
}
   0x9   :  { %s144_s18 = scalar_lea.vmem %s16_s10, 256  ;;  %p149_p4 = scmp.lt.s32.totalorder %s16_s10, %s16_s10 }
   0xa   :  { %p145_p3 = scmp.ne.s32.totalorder %s16_s10, %s144_s18  ;;  %p150_p5 = scmp.lt.s32.totalorder %s144_s18, %s144_s18 }
   0xc   :  { %p151_p6 = por %p150_p5, %p149_p4 }
   0xe   :  { %p152_p7 = pnand %p151_p6, %p145_p3 }
  0x10   :  { %155 = shalt.err (!%p152_p7)
}
  0x11   :  { %s207_s19 = smov 128   ;;  %s208_s20 = smov 8  }
  0x12   :  { %21 = dma.hbm_to_vmem [thread:$0]  %s264_s0, 256, %s16_s10, [#allocation3], %s207_s19, %s207_s19, %s208_s20  }
  0x13   :  { %s209_s23 = smov [#allocation5]   ;;  %s156_s27 = scalar_lea.hbm %s265_s1, 256 }
  0x14   :  { %s27_s24 = sshll.u32 %s209_s23, 4  ;;  %p157_p8 = scmp.ne.s32.totalorder %s265_s1, %s156_s27  ;;  %s28_s24 = int_to_ptr.vmem [resolvable:$true] %s27_s24 }
  0x15   :  { %p160_p9 = scmp.lt.u32.totalorder %s156_s27, %s265_s1 }
  0x17   :  { %p162_p10 = pnand %p160_p9, %p157_p8 }
  0x19   :  { %165 = shalt.err (!%p162_p10)
}
  0x1a   :  { %s166_s4 = scalar_lea.vmem %s28_s24, 256  ;;  %p171_p12 = scmp.lt.s32.totalorder %s28_s24, %s28_s24 }
  0x1b   :  { %p167_p11 = scmp.ne.s32.totalorder %s28_s24, %s166_s4  ;;  %p172_p13 = scmp.lt.s32.totalorder %s166_s4, %s166_s4 }
  0x1d   :  { %p173_p0 = por %p172_p13, %p171_p12 }
  0x1f   :  { %p174_p1 = pnand %p173_p0, %p167_p11 }
  0x21   :  { %177 = shalt.err (!%p174_p1)
}
  0x22   :  { %33 = dma.hbm_to_vmem [thread:$0]  %s265_s1, 256, %s28_s24, [#allocation6], %s207_s19, %s207_s19, %s208_s20  }
  0x23   :  { %200 = dma.done.wait [#allocation3], 256  }
  0x24   :  { %201 = vsyncadd [#allocation3], 4294967040 }
  0x25   :  { %202 = dma.done.wait [#allocation6], 256  }
  0x26   :  { %203 = vsyncadd [#allocation6], 4294967040  ;;  %v40_v0 = vld [vmem:[#allocation2] sm:$0xff]  ;;  %v41_v1 = vld [vmem:[#allocation2 + $0x8] sm:$0xff]  ;;  %s210_s6 = smov 112   ;;  %s211_s1 = smov 16  }
  0x27   :  { %v44_v2 = vmax.f32 %v40_v0, 1e-06  ;;  %v45_v3 = vmax.f32 %v41_v1, 1e-06  ;;  %v42_v6 = vld [vmem:[#allocation5] sm:$0xff]  ;;  %v43_v8 = vld [vmem:[#allocation5 + $0x8] sm:$0xff] }
  0x28   :  { %v52_v7 = vsub.f32 %v42_v6, %v40_v0  ;;  %v53_v10 = vsub.f32 %v43_v8, %v41_v1  ;;  %vm86_vm0 = vcmask 130048   ;;  %s212_s7 = smov [#allocation7]  }
  0x29   :  { %126 = vrcp.f32 %v44_v2  ;;  %s107_s8 = sshll.u32 %s212_s7, 4  ;;  %s108_s8 = int_to_ptr.vmem [resolvable:$true] %s107_s8 }
  0x2a   :  { %128 = vrcp.f32 %v45_v3  ;;  %v54_v9 = vand.u32 2147483647, %v52_v7  ;;  %v55_v13 = vand.u32 2147483647, %v53_v10  ;;  %s178_s10 = scalar_lea.vmem %s108_s8, 128  ;;  %p183_p3 = scmp.lt.s32.totalorder %s108_s8, %s108_s8 }
  0x2b   :  { %130 = vlog2.f32 %v44_v2  ;;  %p179_p2 = scmp.ne.s32.totalorder %s108_s8, %s178_s10  ;;  %p184_p4 = scmp.lt.s32.totalorder %s178_s10, %s178_s10 }
  0x2c   :  { %132 = vlog2.f32 %v45_v3 }
  0x2d   :  { %p185_p5 = por %p184_p4, %p183_p3 }
  0x2f   :  { %p186_p6 = pnand %p185_p5, %p179_p2 }
  0x33   :  { %v127_v4 = vpop.eup %126 }
  0x34   :  { %60 = vrot.lane.b32.xlu0 %v127_v4, %s210_s6  ;;  %v129_v5 = vpop.eup %128 }
  0x35   :  { %v131_v16 = vpop.eup %130 }
  0x36   :  { %v47_v17 = vmul.f32 0.6931472, %v131_v16  ;;  %v133_v18 = vpop.eup %132 }
  0x37   :  { %v49_v20 = vmul.f32 0.6931472, %v133_v18 }
  0x38   :  { %62 = vrot.lane.b32.xlu0 %v129_v5, %s210_s6  ;;  %v50_v19 = vadd.f32 0.6931472, %v47_v17 }
  0x39   :  { %v51_v23 = vadd.f32 0.6931472, %v49_v20 }
  0xa6   :  { %v61_v11 = vpop.permute.xlu0 %60 }
  0xa7   :  { %v66_v12 = vmul.f32 %v61_v11, %v54_v9 }
  0xa9   :  { %70 = vrot.lane.b32.xlu1 %v66_v12, %s211_s1 }
  0xaa   :  { %v63_v14 = vpop.permute.xlu0 %62 }
  0xab   :  { %v67_v15 = vmul.f32 %v63_v14, %v55_v13 }
  0xad   :  { %72 = vrot.lane.b32.xlu1 %v67_v15, %s211_s1 }
 0x11b   :  { %v71_v21 = vpop.permute.xlu1 %70 }
 0x11c   :  { %v76_v22 = vadd.f32 %v71_v21, %v50_v19 }
 0x11e   :  { %80 = vrot.lane.b32.xlu0 %v76_v22, %s210_s6 }
 0x11f   :  { %v73_v24 = vpop.permute.xlu1 %72 }
 0x120   :  { %v77_v25 = vadd.f32 %v73_v24, %v51_v23 }
 0x122   :  { %82 = vrot.lane.b32.xlu1 %v77_v25, %s210_s6 }
 0x190   :  { %v81_v26 = vpop.permute.xlu0 %80 }
 0x191   :  { %v87_v28 = vsel %vm86_vm0, %v81_v26, 0.0 }
 0x194   :  { %v83_v27 = vpop.permute.xlu1 %82 }
 0x195   :  { %v88_v29 = vsel %vm86_vm0, %v83_v27, 0.0 }
 0x196   :  { %v89_v30 = vadd.f32 %v88_v29, %v87_v28 }
 0x198   :  { %90 = vadd.xlane.f32.xlu0 %v89_v30 }
 0x225   :  { %v91_v31 = vpop.xlane.xlu0 %90 }
 0x226   :  { %v92_v32 = vrot.slane %v91_v31, 4 }
 0x228   :  { %v93_v33 = vadd.f32 %v92_v32, %v91_v31 }
 0x22a   :  { %v94_v34 = vrot.slane %v93_v33, 2 }
 0x22c   :  { %v95_v35 = vadd.f32 %v94_v34, %v93_v33 }
 0x22e   :  { %v96_v36 = vrot.slane %v95_v35, 1 }
 0x230   :  { %v97_v37 = vadd.f32 %v96_v36, %v95_v35 }
 0x232   :  { %117 = vpush %v97_v37 }
 0x263   :  { %s118_s9 = spop %117 }
 0x264   :  { %v99_v38 = vstv %s118_s9 }
 0x265   :  { %100 = vst [vmem:[#allocation7] sm:$0xff] %v99_v38 }
 0x266   :  { %189 = shalt.err (!%p186_p6)
}
 0x267   :  { %s190_s13 = scalar_lea.hbm %s266_s2, 128 }
 0x268   :  { %p191_p7 = scmp.ne.s32.totalorder %s266_s2, %s190_s13  ;;  %p194_p8 = scmp.lt.u32.totalorder %s190_s13, %s266_s2 }
 0x26a   :  { %p196_p9 = pnand %p194_p8, %p191_p7 }
 0x26c   :  { %199 = shalt.err (!%p196_p9)
}
 0x26d   :  { %110 = dma.vmem_to_hbm [thread:$0]  %s108_s8, 128, %s266_s2, [#allocation4]  }
 0x26e   :  { %204 = dma.done.wait [#allocation4], 128  }
 0x26f   :  { %205 = vsyncadd [#allocation4], 4294967168 }
 0x270   :  { %114 = vsyncpa [#allocation3], 1 }
 0x271   :  { %115 = vsyncpa [#allocation6], 1 }
 0x272   :  { %116 = vsyncpa [#allocation4], 1 }

</bundles_post_ra>
